<compile_context>
chip_gen: v7x
topology: tpu7x:2x2x1
jax: 0.10.0
libtpu: 0.0.40
codegen_flags: <defaults>
</compile_context>

<pallas_src>
import functools

import jax
import jax.numpy as jnp
from jax.experimental import pallas as pl
from jax.experimental.pallas import tpu as pltpu

POS_WEIGHT = 8.0          # nn.BCEWithLogitsLoss(pos_weight=torch.tensor([8.0]))
NUM_CLASSES = 6           # len(HDLoss.steps); every step == 1
_LANES = 128


def _round_up(x, m):
    return ((x + m - 1) // m) * m


def _default_max_tile_rows():
    """Generation-aware DMA block rows (f32 block bytes = rows*128*4)."""
    try:
        kind = jax.devices()[0].device_kind.lower()
    except Exception:
        return 4096
    if "v6" in kind or "v7" in kind:
        return 8192        # 4 MiB/input block, 16 MiB double-buffered (< 32 MiB default)
    return 4096            # v5e and older: stay under the 16 MiB scoped-VMEM default


def _weighted_bce_with_logits(x, z):
    """Numerically stable BCEWithLogits with pos_weight p, elementwise:
       loss = (1 - z) * x + (1 + (p - 1) * z) * softplus(-x)
       softplus(-x) = max(-x, 0) + log1p(exp(-|x|))
    """
    sp = jnp.maximum(-x, 0.0) + jnp.log1p(jnp.exp(-jnp.abs(x)))
    return (1.0 - z) * x + (1.0 + (POS_WEIGHT - 1.0) * z) * sp


def _hd_loss_kernel(pred_ref, lab_ref, out_ref, *,
                    main_rows, tile_rows, chunk_rows, steps_per_core):
    c = pl.program_id(0)           # TensorCore on v7x megacore; outer loop on v5e/v6e
    i = pl.program_id(1)           # step within this core's block range

    @pl.when(i == 0)
    def _init():
        out_ref[...] = jnp.zeros_like(out_ref)   # per-core (chunk_rows, 128) accumulator

    # Valid rows remaining at the start of this block.  Row-count arithmetic (not
    # flat element indices), so int32 cannot overflow at realistic batch sizes.
    # The UNCLAMPED block index is used, so the clamped duplicate block (odd
    # block count split over 2 cores) gets rows_valid <= 0 and is fully masked.
    block = c * steps_per_core + i
    rows_valid = main_rows - block * tile_rows

    # Big DMA block, small compute chunks: intermediates stay (chunk_rows, 128).
    n_chunks = tile_rows // chunk_rows

    @pl.loop(0, n_chunks)
    def _(k):
        r0 = pl.multiple_of(k * chunk_rows, chunk_rows)
        x = pred_ref[pl.ds(r0, chunk_rows), :].astype(jnp.float32)
        z = lab_ref[pl.ds(r0, chunk_rows), :].astype(jnp.float32)
        pe = _weighted_bce_with_logits(x, z)
        rows_left = rows_valid - r0

        @pl.when(rows_left >= chunk_rows)          # fully valid chunk: no mask ops
        def _full():
            out_ref[...] += pe

        @pl.when(rows_left < chunk_rows)           # ragged tail / duplicate chunk
        def _ragged():
            row_ids = jax.lax.broadcasted_iota(jnp.int32, (chunk_rows, _LANES), 0)
            # garbage rows (compiler-padded / stale) may be Inf/NaN; the select
            # discards them, so nothing propagates.
            out_ref[...] += jnp.where(row_ids < rows_left, pe, 0.0)


def _hd_loss_main_sum(pred_slab, lab_slab, max_tile_rows):
    """Sum of per-element weighted BCE over a lane-dense (main_rows, 128) slab."""
    main_rows = pred_slab.shape[0]               # guaranteed >= 8 by the caller

    max_tile_rows = max(8, _round_up(int(max_tile_rows), 8))
    # Keep the block no larger than the array (last block may still be ragged).
    tile_rows = min(max_tile_rows, (main_rows // 8) * 8)
    chunk_rows = 64 if tile_rows % 64 == 0 else 8

    grid_blocks = pl.cdiv(main_rows, tile_rows)
    num_cores = 2 if grid_blocks >= 2 else 1     # v7x: split rows across both TCs
    steps_per_core = pl.cdiv(grid_blocks, num_cores)
    needs_clamp = num_cores * steps_per_core > grid_blocks

    def in_index_map(c, i):
        b = c * steps_per_core + i
        if needs_clamp:
            # Odd block count: core 1's last step revisits the last real block;
            # the kernel masks it out entirely (rows_valid <= 0), and Pallas skips
            # the repeated DMA since the block index is unchanged.
            b = jnp.minimum(b, grid_blocks - 1)
        return (b, 0)

    kernel = functools.partial(
        _hd_loss_kernel,
        main_rows=main_rows, tile_rows=tile_rows,
        chunk_rows=chunk_rows, steps_per_core=steps_per_core)

    n_elems = main_rows * _LANES
    bytes_accessed = (n_elems * pred_slab.dtype.itemsize
                      + n_elems * lab_slab.dtype.itemsize
                      + num_cores * chunk_rows * _LANES * 4)

    partials = pl.pallas_call(
        kernel,
        out_shape=jax.ShapeDtypeStruct((num_cores * chunk_rows, _LANES), jnp.float32),
        grid_spec=pltpu.PrefetchScalarGridSpec(
            num_scalar_prefetch=0,
            grid=(num_cores, steps_per_core),
            in_specs=[
                pl.BlockSpec((tile_rows, _LANES), in_index_map),
                pl.BlockSpec((tile_rows, _LANES), in_index_map),
            ],
            out_specs=pl.BlockSpec((chunk_rows, _LANES), lambda c, i: (c, 0)),
        ),
        compiler_params=pltpu.CompilerParams(
            dimension_semantics=("parallel", "arbitrary")),
        cost_estimate=pl.CostEstimate(
            flops=10 * n_elems,
            transcendentals=2 * n_elems,
            bytes_accessed=bytes_accessed),
    )(pred_slab, lab_slab)

    # Tiny (<= 128x128) cross-lane reduce left to XLA; fuses with tail/scale.
    return jnp.sum(partials, dtype=jnp.float32)


def hd_loss(predicts: jax.Array, labels: jax.Array, *, max_tile_rows=None) -> jax.Array:
    """predicts: (B, C) logits; labels: (B, 1, C) {0,1} targets (any float/int dtype).

    Equals sum_i mean_b BCEWithLogits(pos_weight=8)(predicts[:, i], labels[:, 0, i]).
    """
    if max_tile_rows is None:
        max_tile_rows = _default_max_tile_rows()

    labels2d = jnp.squeeze(labels, axis=1)       # labels.squeeze(1)
    B = predicts.shape[0]
    C = labels2d.shape[1]                        # loop count in the torch forward
    # steps are all 1 -> exactly one logit column per class.  NOTE: if upstream
    # passes more than C columns, this slice materializes a strided copy in HBM
    # before the lane-dense reshape — pass exactly C columns to avoid it.
    preds = predicts if predicts.shape[1] == C else predicts[:, :C]

    n_valid = B * C
    main_rows = n_valid // _LANES                # lane-dense bulk -> Pallas kernel
    if main_rows < 8:
        main_rows = 0                            # too small for a sublane-dense tile
    n_main = main_rows * _LANES
    tail = n_valid - n_main                      # small ragged remainder -> plain JAX

    flat_p = preds.reshape(-1)                   # contiguous (B, C): reshape is a bitcast
    flat_z = labels2d.reshape(-1)

    total = jnp.zeros((), jnp.float32)
    if main_rows > 0:
        if tail == 0:
            # Zero-copy fast path ((B*C) % 128 == 0, e.g. B % 64 == 0 with C=6).
            p_slab = flat_p.reshape(main_rows, _LANES)
            z_slab = flat_z.reshape(main_rows, _LANES)
        else:
            # Ragged case: prefix-slice the bulk; the <=127-element tail is summed below.
            p_slab = flat_p[:n_main].reshape(main_rows, _LANES)
            z_slab = flat_z[:n_main].reshape(main_rows, _LANES)
        total = total + _hd_loss_main_sum(p_slab, z_slab, max_tile_rows)
    if tail > 0:
        xt = flat_p[n_main:].astype(jnp.float32)
        zt = flat_z[n_main:].astype(jnp.float32)
        total = total + jnp.sum(_weighted_bce_with_logits(xt, zt))
    return total / B


def _hd_loss_ref(predicts, labels):
    """Plain-JAX reference mirroring the PyTorch loop exactly."""
    labels2d = jnp.squeeze(labels, axis=1)
    cum = jnp.zeros((), jnp.float32)
    j = 0
    for i in range(labels2d.shape[1]):
        x = predicts[:, j:j + 1].astype(jnp.float32)
        z = labels2d[:, i:i + 1].astype(jnp.float32)
        cum = cum + jnp.mean(_weighted_bce_with_logits(x, z))
        j += 1
    return cum


if __name__ == "__main__":
    key = jax.random.PRNGKey(0)
    ks = jax.random.split(key, 10)

    def check(got, want, name):
        assert jnp.allclose(got, want, rtol=1e-4, atol=1e-4), (name, got, want)

    # 1) Zero-copy fast path (B*C = 1536 = 12*128), 2-core grid, ragged last block.
    B = 256
    p1 = jax.random.normal(ks[0], (B, NUM_CLASSES), dtype=jnp.float32)
    l1 = (jax.random.uniform(ks[1], (B, 1, NUM_CLASSES)) > 0.5).astype(jnp.float32)
    out1 = hd_loss(p1, l1)
    jax.block_until_ready(out1)
    check(out1, _hd_loss_ref(p1, l1), "fast-path")

    # 2) bf16 labels upcast in-kernel, 2-core grid, ragged last block, 8-element
    #    plain-JAX tail epilogue (B*C = 1800 -> 14 full rows + 8 tail elements).
    B = 300
    p2 = jax.random.normal(ks[2], (B, NUM_CLASSES), dtype=jnp.float32)
    l2 = (jax.random.uniform(ks[3], (B, 1, NUM_CLASSES)) > 0.5).astype(jnp.bfloat16)
    out2 = hd_loss(p2, l2, max_tile_rows=8)
    jax.block_until_ready(out2)
    check(out2, _hd_loss_ref(p2, l2), "two-core+tail")

    # 3) Odd block count -> clamped duplicate block fully masked, multi-step
    #    accumulation per core, multi-chunk blocks (B*C = 6000 -> 46 rows, tile 16).
    B = 1000
    p3 = jax.random.normal(ks[4], (B, NUM_CLASSES), dtype=jnp.float32)
    l3 = (jax.random.uniform(ks[5], (B, 1, NUM_CLASSES)) > 0.5).astype(jnp.float32)
    out3 = hd_loss(p3, l3, max_tile_rows=16)
    jax.block_until_ready(out3)
    check(out3, _hd_loss_ref(p3, l3), "odd-blocks")

    # 4) chunk_rows = 64 accumulator path (B*C = 8256 -> 64 rows + 64 tail elems).
    B = 1376
    p4 = jax.random.normal(ks[6], (B, NUM_CLASSES), dtype=jnp.float32)
    l4 = (jax.random.uniform(ks[7], (B, 1, NUM_CLASSES)) > 0.5).astype(jnp.float32)
    out4 = hd_loss(p4, l4)
    jax.block_until_ready(out4)
    check(out4, _hd_loss_ref(p4, l4), "chunk64")

    # 5) Tiny batch (B*C < 128): pure plain-JAX fallback path.
    p5, l5 = p1[:8], l1[:8]
    out5 = hd_loss(p5, l5)
    jax.block_until_ready(out5)
    check(out5, _hd_loss_ref(p5, l5), "tiny-fallback")

    print("KERNEL_OK")
</pallas_src>

<mosaic_0001>
module attributes {stable_mosaic.version = 11 : i64} {
  func.func @_hd_loss_kernel(%arg0: i32, %arg1: i32, %arg2: memref<8x128xf32, #tpu.memory_space<vmem>>, %arg3: memref<8x128xf32, #tpu.memory_space<vmem>>, %arg4: memref<8x128xf32, #tpu.memory_space<vmem>>) attributes {dimension_semantics = [#tpu.dimension_semantics<parallel>, #tpu.dimension_semantics<arbitrary>], iteration_bounds = array<i64: 2, 1>, scalar_prefetch = 0 : i64, scratch_operands = 0 : i64, tpu.core_type = #tpu.core_type<tc>, window_params = [{transform_indices = @transform_0, window_bounds = array<i64: 8, 128>}, {transform_indices = @transform_1, window_bounds = array<i64: 8, 128>}, {transform_indices = @transform_2, window_bounds = array<i64: 8, 128>}]} {
    %c0_i32 = arith.constant 0 : i32
    %0 = arith.cmpi eq, %arg1, %c0_i32 : i32
    %1 = arith.extui %0 : i1 to i32
    %c0_i32_0 = arith.constant 0 : i32
    %2 = arith.cmpi ne, %1, %c0_i32_0 : i32
    scf.if %2 {
      %cst_16 = arith.constant 0.000000e+00 : f32
      %41 = vector.broadcast %cst_16 : f32 to vector<8x128xf32>
      %c0_17 = arith.constant 0 : index
      %c0_18 = arith.constant 0 : index
      %42 = vector.load %arg4[%c0_17, %c0_18] : memref<8x128xf32, #tpu.memory_space<vmem>>, vector<8x128xf32>
      tpu.vector_store %arg4[%c0_17, %c0_18], %41 {strides = array<i32>} : memref<8x128xf32, #tpu.memory_space<vmem>>, vector<8x128xf32>,
    } else {
    }
    %c1_i32 = arith.constant 1 : i32
    %3 = arith.muli %arg0, %c1_i32 : i32
    %4 = arith.addi %3, %arg1 : i32
    %c8_i32 = arith.constant 8 : i32
    %5 = arith.muli %4, %c8_i32 : i32
    %c12_i32 = arith.constant 12 : i32
    %6 = arith.subi %c12_i32, %5 : i32
    %c0_i32_1 = arith.constant 0 : i32
    %c1_i32_2 = arith.constant 1 : i32
    %7 = arith.muli %c0_i32_1, %c1_i32_2 : i32
    %c0_i32_3 = arith.constant 0 : i32
    %8 = arith.addi %c0_i32_3, %7 : i32
    %c8_i32_4 = arith.constant 8 : i32
    %9 = arith.muli %8, %c8_i32_4 : i32
    %10 = tpu.assume_multiple %9, 8 : i32
    %11 = arith.index_cast %10 : i32 to index
    %c0 = arith.constant 0 : index
    %12 = vector.load %arg2[%11, %c0] : memref<8x128xf32, #tpu.memory_space<vmem>>, vector<8x128xf32>
    %13 = arith.index_cast %10 : i32 to index
    %c0_5 = arith.constant 0 : index
    %14 = vector.load %arg3[%13, %c0_5] : memref<8x128xf32, #tpu.memory_space<vmem>>, vector<8x128xf32>
    %cst = arith.constant 0.000000e+00 : f32
    %15 = vector.broadcast %cst : f32 to vector<8x128xf32>
    %16 = arith.subf %15, %12 : vector<8x128xf32>
    %cst_6 = arith.constant 0.000000e+00 : f32
    %17 = vector.broadcast %cst_6 : f32 to vector<8x128xf32>
    %18 = arith.maximumf %16, %17 : vector<8x128xf32>
    %19 = math.absf %12 : vector<8x128xf32>
    %cst_7 = arith.constant 0.000000e+00 : f32
    %20 = vector.broadcast %cst_7 : f32 to vector<8x128xf32>
    %21 = arith.subf %20, %19 : vector<8x128xf32>
    %22 = math.exp %21 : vector<8x128xf32>
    %23 = math.log1p %22 : vector<8x128xf32>
    %24 = arith.addf %18, %23 : vector<8x128xf32>
    %cst_8 = arith.constant 1.000000e+00 : f32
    %25 = vector.broadcast %cst_8 : f32 to vector<8x128xf32>
    %26 = arith.subf %25, %14 : vector<8x128xf32>
    %27 = arith.mulf %26, %12 : vector<8x128xf32>
    %cst_9 = arith.constant 7.000000e+00 : f32
    %28 = vector.broadcast %cst_9 : f32 to vector<8x128xf32>
    %29 = arith.mulf %28, %14 : vector<8x128xf32>
    %cst_10 = arith.constant 1.000000e+00 : f32
    %30 = vector.broadcast %cst_10 : f32 to vector<8x128xf32>
    %31 = arith.addf %30, %29 : vector<8x128xf32>
    %32 = arith.mulf %31, %24 : vector<8x128xf32>
    %33 = arith.addf %27, %32 : vector<8x128xf32>
    %34 = arith.subi %6, %10 : i32
    %c8_i32_11 = arith.constant 8 : i32
    %35 = arith.cmpi sge, %34, %c8_i32_11 : i32
    %36 = arith.extui %35 : i1 to i32
    %c0_i32_12 = arith.constant 0 : i32
    %37 = arith.cmpi ne, %36, %c0_i32_12 : i32
    scf.if %37 {
      %c0_16 = arith.constant 0 : index
      %c0_17 = arith.constant 0 : index
      %41 = vector.load %arg4[%c0_16, %c0_17] : memref<8x128xf32, #tpu.memory_space<vmem>>, vector<8x128xf32>
      %42 = arith.addf %41, %33 : vector<8x128xf32>
      %c0_18 = arith.constant 0 : index
      %c0_19 = arith.constant 0 : index
      %43 = vector.load %arg4[%c0_18, %c0_19] : memref<8x128xf32, #tpu.memory_space<vmem>>, vector<8x128xf32>
      tpu.vector_store %arg4[%c0_18, %c0_19], %42 {strides = array<i32>} : memref<8x128xf32, #tpu.memory_space<vmem>>, vector<8x128xf32>,
    } else {
    }
    %c8_i32_13 = arith.constant 8 : i32
    %38 = arith.cmpi slt, %34, %c8_i32_13 : i32
    %39 = arith.extui %38 : i1 to i32
    %c0_i32_14 = arith.constant 0 : i32
    %40 = arith.cmpi ne, %39, %c0_i32_14 : i32
    scf.if %40 {
      %41 = tpu.iota {dimensions = array<i32: 0>} : vector<8x128xi32>
      %c0_16 = arith.constant 0 : index
      %c0_17 = arith.constant 0 : index
      %42 = vector.load %arg4[%c0_16, %c0_17] : memref<8x128xf32, #tpu.memory_space<vmem>>, vector<8x128xf32>
      %43 = vector.broadcast %34 : i32 to vector<8x128xi32>
      %44 = arith.cmpi slt, %41, %43 : vector<8x128xi32>
      %cst_18 = arith.constant 0.000000e+00 : f32
      %45 = vector.broadcast %cst_18 : f32 to vector<8x128xf32>
      %46 = arith.select %44, %33, %45 : vector<8x128xi1>, vector<8x128xf32>
      %47 = arith.addf %42, %46 : vector<8x128xf32>
      %c0_19 = arith.constant 0 : index
      %c0_20 = arith.constant 0 : index
      %48 = vector.load %arg4[%c0_19, %c0_20] : memref<8x128xf32, #tpu.memory_space<vmem>>, vector<8x128xf32>
      tpu.vector_store %arg4[%c0_19, %c0_20], %47 {strides = array<i32>} : memref<8x128xf32, #tpu.memory_space<vmem>>, vector<8x128xf32>,
    } else {
    }
    %c1_i32_15 = arith.constant 1 : i32
    return
  }
  func.func @transform_0(%arg0: i32, %arg1: i32) -> (i32, i32) {
    %c1_i32 = arith.constant 1 : i32
    %0 = arith.muli %arg0, %c1_i32 : i32
    %1 = arith.addi %0, %arg1 : i32
    %c0_i32 = arith.constant 0 : i32
    %c0_i32_0 = arith.constant 0 : i32
    return %1, %c0_i32 : i32, i32
  }
  func.func @transform_1(%arg0: i32, %arg1: i32) -> (i32, i32) {
    %c1_i32 = arith.constant 1 : i32
    %0 = arith.muli %arg0, %c1_i32 : i32
    %1 = arith.addi %0, %arg1 : i32
    %c0_i32 = arith.constant 0 : i32
    %c0_i32_0 = arith.constant 0 : i32
    return %1, %c0_i32 : i32, i32
  }
  func.func @transform_2(%arg0: i32, %arg1: i32) -> (i32, i32) {
    %c0_i32 = arith.constant 0 : i32
    %c0_i32_0 = arith.constant 0 : i32
    return %arg0, %c0_i32 : i32, i32
  }
}

</mosaic_0001>

<bundles_post_ra>
// kernel: tpu_custom_call.1
= control target key start
LH: loop header
LB: loop body
LE: loop exit
PB: predicated region body
PF: predicated region fallthrough
CT: control target
= control target key end

     0   :  { %7 = vsyncpa [#allocation3], 0  ;;  %s871_s0 = inlined_call_operand.hbm [shape: f32[12,128], index: 0, kind: input, shape index: {}]   ;;  %s872_s1 = inlined_call_operand.hbm [shape: f32[12,128], index: 1, kind: input, shape index: {}]   ;;  %s873_s2 = inlined_call_operand.hbm [shape: f32[16,128], index: 2, kind: output, shape index: {}]  }
   0x1   :  { %9 = vsyncpa [#allocation3 + $0x1], 0 }
   0x2   :  { %10 = vsyncpa [#allocation6], 0 }
   0x3   :  { %12 = vsyncpa [#allocation6 + $0x1], 0 }
   0x4   :  { %13 = vsyncpa [#allocation4], 0 }
   0x5   :  { %15 = vsyncpa [#allocation4 + $0x1], 0  ;;  %s643_s9 = smov 0   ;;  %s645_s10 = smov 0  }
   0x6   :  { %s647_s11 = smov 0   ;;  %s649_s12 = smov 0  }
   0x7   :  { %s651_s13 = smov 0   ;;  %s653_s14 = smov 0  }
   0x8 LB: > { %s385_s15 = sadd.s32 4294967295, %s622_s14   ;;  %s386_s16 = sadd.s32 4294967294, %s622_s14   ;;  %s622_s14 = sphi %s653_s14, %s21_s14   ;;  %s618_s13 = sphi %s651_s13, %s893_s13   ;;  %s614_s12 = sphi %s649_s12, %s892_s12   ;;  %s610_s11 = sphi %s647_s11, %s891_s11   ;;  %s606_s10 = sphi %s645_s10, %s890_s10   ;;  %s602_s9 = sphi %s643_s9, %s889_s9  }
   0x9   : > { %s33_s17 = sadd.s32 1, %s618_s13  ;;  %s42_s18 = sadd.s32 1, %s610_s11 }
   0xa   : > { %p35_p0 = scmp.ge.s32.totalorder %s33_s17, 2  ;;  %p49_p1 = scmp.ne.s32.totalorder %s610_s11, %s606_s10 }
   0xb   : > { %p50_p2 = scmp.eq.s32.totalorder %s622_s14, 0  ;;  %p55_p3 = scmp.ne.s32.totalorder %s606_s10, %s602_s9 }
   0xc   : > { %s895_s17 = smov (%p35_p0, %s33_s17), 0  ;;  %p56_p5 = scmp.eq.s32.totalorder %s385_s15, 0 }
   0xd   : > { %p684_p4 = por %p50_p2, %p49_p1  ;;  %s39_s20 = ssub.s32 %s618_s13, %s895_s17 }
   0xe   : > { %p107_p6 = scmp.eq.s32.totalorder %s385_s15, 1  ;;  %p40_p7 = scmp.eq.s32.totalorder %s39_s20, 0 }
   0xf   : > { %p690_p8 = por %p56_p5, %p55_p3  ;;  %p113_p10 = scmp.eq.s32.totalorder %s386_s16, 1 }
  0x10   : > { %p694_p9 = por %p107_p6, %p49_p1  ;;  %p421_p13 = scmp.lt.s32.totalorder %s622_s14, 2 }
  0x11   : > { %s877_s21 = scalar_select %p690_p8, 1, 0 }
  0x12   : > { %s878_s22 = scalar_select %p694_p9, 1, 0 }
  0x13   : > { %s699_s23 = scalar_select %p40_p7, %s610_s11, %s42_s18  }
  0x14   : > { %p701_p11 = por %p113_p10, %p55_p3  ;;  %s708_s25 = sand.u32 1, %s610_s11  }
  0x15   : > { %s389_s26 = sshll.u32 %s708_s25, 3  ;;  %s390_s27 = sshll.u32 %s618_s13, 7 }
  0x16   : > { %s879_s24 = scalar_select %p701_p11, 1, 0 }
  0x17   : > { %s717_s30 = scalar_lea.hbm %s871_s0, %s390_s27  ;;  %s137_s3 = scalar_lea.vmem [#allocation2], %s389_s26 }
  0x18   : > { %s145_s4 = sshll.u32 %s137_s3, 4  ;;  %p725_p0 = pnand %p421_p13, %p684_p4  ;;  %s721_s4 = int_to_ptr.vmem [resolvable:$true] %s145_s4 }
  0x19   : > { %s134_s6 = scalar_lea.sflag [#allocation3], %s708_s25  ;;  %s476_s7 = scalar_lea.hbm %s717_s30, 128 }
  0x1a   : > { %p477_p3 = scmp.ne.s32.totalorder %s717_s30, %s476_s7  ;;  %p478_p5 = pneg %p725_p0 }
  0x1b   : > { %s481_s16 = scalar_lea.hbm %s871_s0, 256  ;;  %p482_p4 = scmp.lt.u32.totalorder %s717_s30, %s871_s0 }
  0x1c   : > { %p479_p6 = pnand %p478_p5, %p477_p3  ;;  %p483_p10 = scmp.lt.u32.totalorder %s481_s16, %s476_s7 }
  0x1d   : > { %p485_p12 = scmp.lt.u32.totalorder %s476_s7, %s717_s30 }
  0x1e   : > { %p480_p7 = pneg %p479_p6  ;;  %p484_p13 = por %p483_p10, %p482_p4 }
  0x20   : > { %p486_p1 = por %p485_p12, %p484_p13 }
  0x22   : > { %p487_p2 = pnand %p486_p1, %p480_p7 }
  0x24   : > { %490 = shalt.err (!%p487_p2)
}
  0x25   : > { %s491_s20 = scalar_lea.vmem %s721_s4, 128  ;;  %s624_s28 = smov [#allocation2]  }
  0x26   : > { %p492_p3 = scmp.ne.s32.totalorder %s721_s4, %s491_s20  ;;  %s496_s29 = sshll.u32 %s624_s28, 4  ;;  %s497_s29 = int_to_ptr.vmem [resolvable:$false] %s496_s29 }
  0x27   : > { %s498_s3 = scalar_lea.vmem %s497_s29, 256  ;;  %p499_p9 = scmp.lt.s32.totalorder %s721_s4, %s497_s29 }
  0x28   : > { %p494_p6 = pnand %p492_p3, %p478_p5  ;;  %p500_p4 = scmp.lt.s32.totalorder %s498_s3, %s491_s20 }
  0x2a   : > { %p495_p11 = pneg %p494_p6  ;;  %p501_p10 = por %p500_p4, %p499_p9 }
  0x2c   : > { %p502_p12 = pnand %p501_p10, %p495_p11 }
  0x2e   : > { %505 = shalt.err (!%p502_p12)
}
  0x2f   : > { %413 = dma.hbm_to_vmem [thread:$0]  (!%p725_p0), %s717_s30, 128, %s721_s4, %s134_s6  }
  0x30   : > { %p881_p1 = scmp.lt.s32.totalorder %s622_s14, 3  ;;  %p882_p2 = scmp.ge.s32.totalorder %s622_s14, 1 }
  0x31   : > { %s770_s16 = scalar_lea.hbm %s872_s1, %s390_s27  ;;  %s156_s18 = scalar_lea.vmem [#allocation5], %s389_s26 }
  0x32   : > { %p761_p7 = pnand %p882_p2, %p881_p1  ;;  %s164_s19 = sshll.u32 %s156_s18, 4  ;;  %s165_s19 = int_to_ptr.vmem [resolvable:$true] %s164_s19 }
  0x33   : > { %s153_s30 = scalar_lea.sflag [#allocation6], %s708_s25  ;;  %s506_s4 = scalar_lea.hbm %s770_s16, 128 }
  0x34   : > { %s883_s7 = scalar_select %p761_p7, 1, 0 }
  0x35   : > { %p507_p9 = scmp.ne.s32.totalorder %s770_s16, %s506_s4  ;;  %s511_s27 = scalar_lea.hbm %s872_s1, 256 }
  0x36   : > { %p512_p3 = scmp.lt.u32.totalorder %s770_s16, %s872_s1  ;;  %p513_p6 = scmp.lt.u32.totalorder %s511_s27, %s506_s4 }
  0x37   : > { %p509_p11 = pnand %p507_p9, %p478_p5  ;;  %p515_p10 = scmp.lt.u32.totalorder %s506_s4, %s770_s16 }
  0x38   : > { %p514_p4 = por %p513_p6, %p512_p3 }
  0x39   : > { %p510_p13 = pneg %p509_p11 }
  0x3a   : > { %p516_p12 = por %p515_p10, %p514_p4 }
  0x3c   : > { %p517_p1 = pnand %p516_p12, %p510_p13 }
  0x3e   : > { %520 = shalt.err (!%p517_p1)
}
  0x3f   : > { %s521_s25 = scalar_lea.vmem %s165_s19, 128  ;;  %s625_s26 = smov [#allocation5]  }
  0x40   : > { %p522_p2 = scmp.ne.s32.totalorder %s165_s19, %s521_s25  ;;  %s526_s3 = sshll.u32 %s625_s26, 4  ;;  %s527_s3 = int_to_ptr.vmem [resolvable:$false] %s526_s3 }
  0x41   : > { %s528_s8 = scalar_lea.vmem %s527_s3, 256  ;;  %p529_p8 = scmp.lt.s32.totalorder %s165_s19, %s527_s3 }
  0x42   : > { %p524_p9 = pnand %p522_p2, %p478_p5  ;;  %p530_p7 = scmp.lt.s32.totalorder %s528_s8, %s521_s25 }
  0x44   : > { %p525_p11 = pneg %p524_p9  ;;  %p531_p3 = por %p530_p7, %p529_p8 }
  0x46   : > { %p532_p6 = pnand %p531_p3, %p525_p11 }
  0x48   : > { %535 = shalt.err (!%p532_p6)
}
  0x49   : > { %416 = dma.hbm_to_vmem [thread:$0]  (!%p725_p0), %s770_s16, 128, %s165_s19, %s153_s30  }
  0x4a   : > { %p884_p13 = scmp.ne.s32.totalorder %s883_s7, 0 }
  0x4b   : > { %s797_s15 = sand.u32 (!%p884_p13), 1, %s606_s10   ;;  %p885_p5 = scmp.ne.s32.totalorder (!%p884_p13), %s877_s21, 0 }
  0x4c   : > { %173 = sbr.rel (%p884_p13) target bundleno = 164 (0xa4), region = 28  ;;  %s394_s18 = sshll.u32 (!%p884_p13), %s797_s15, 3 }
  0x4d   : > { %s176_s4 = scalar_lea.sflag (!%p884_p13), [#allocation3], %s797_s15  ;;  %s179_s6 = scalar_lea.vmem (!%p884_p13), [#allocation2], %s394_s18 }
  0x53   : > { %589 = dma.done.wait (%p885_p5), %s176_s4, 128  }
  0x54   : > { %591 = vsyncadd (%p885_p5), %s176_s4, 4294967168  ;;  %s185_s5 = scalar_lea.sflag [#allocation6], %s797_s15  ;;  %s188_s16 = scalar_lea.vmem [#allocation5], %s394_s18 }
  0x55   : > { %593 = dma.done.wait (%p885_p5), %s185_s5, 128  }
  0x56   : > { %595 = vsyncadd (%p885_p5), %s185_s5, 4294967168  ;;  %s397_s7 = sshll.u32 %s614_s12, 3  ;;  %s811_s19 = scalar_lea.vmem [#allocation7], %s394_s18  ;;  %v626_v0 = vmov 0.0   ;;  %v224_v1 = vld [vmem:[%s179_s6] sm:$0xff]  ;;  %v225_v8 = vld [vmem:[%s188_s16] sm:$0xff] }
  0x57   : > { %220 = vst [vmem:[%s811_s19] sm:$0xff] %v626_v0  ;;  %s814_s30 = ssub.s32 12, %s397_s7  ;;  %v228_v2 = vand.u32 2147483647, %v224_v1  ;;  %v226_v10 = vsub.f32 0.0, %v224_v1  ;;  %v244_v12 = vmul.f32 7.0, %v225_v8  ;;  %v242_v16 = vsub.f32 1.0, %v225_v8 }
  0x58   : > { %p398_p8 = scmp.lt.s32.totalorder %s814_s30, 8 }
  0x59   : > { %v229_v3 = vsub.f32 0.0, %v228_v2  ;;  %v227_v15 = vmax.f32 %v226_v10, 0.0  ;;  %v245_v18 = vadd.f32 1.0, %v244_v12  ;;  %v243_v21 = vmul.f32 %v242_v16, %v224_v1 }
  0x5b   : > { %v230_v4 = vmul.f32 1.442695, %v229_v3 }
  0x5d   : > { %472 = vpow2.f32 %v230_v4 }
  0x5e   : > { %v253_v24 = vld [vmem:[%s811_s19] sm:$0xff] (!%p398_p8) }
  0x67   : > { %v473_v5 = vpop.eup %472 }
  0x68   : > { %v232_v6 = vadd.f32 1.0, %v473_v5  ;;  %v235_v7 = vmul.f32 -0.5, %v473_v5  ;;  %v238_v11 = vand.u32 2147483647, %v473_v5 }
  0x6a   : > { %474 = vlog2.f32 %v232_v6  ;;  %v236_v9 = vadd.f32 1.0, %v235_v7  ;;  %vm239_vm0 = vcmp.lt.f32.partialorder %v238_v11, 0.0004427343 }
  0x6c   : > { %v237_v13 = vmul.f32 %v473_v5, %v236_v9 }
  0x74   : > { %v475_v14 = vpop.eup %474 }
  0x75   : > { %v234_v17 = vmul.f32 0.6931472, %v475_v14 }
  0x76   : > { %252 = sbr.rel (%p398_p8) target bundleno = 129 (0x81), region = 44 }
  0x77   : > { %v240_v19 = vsel %vm239_vm0, %v237_v13, %v234_v17 }
  0x78   : > { %v241_v20 = vadd.f32 %v240_v19, %v227_v15 }
  0x7a   : > { %v246_v22 = vmul.f32 %v245_v18, %v241_v20 }
  0x7c   : > { %v247_v23 = vadd.f32 %v246_v22, %v243_v21 }
  0x7e   : > { %v254_v25 = vadd.f32 %v253_v24, %v247_v23 }
  0x80   : > { %255 = vst [vmem:[%s811_s19] sm:$0xff] %v254_v25 }
  0x81 PF: > { %p399_p0 = scmp.ge.s32.totalorder %s814_s30, 8 }
  0x82   : > { %v260_v26 = vlaneseq (!%p399_p0)  ;;  %v263_v27 = vstv (!%p399_p0), %s814_s30 }
  0x83   : > { %259 = sbr.rel (%p399_p0) target bundleno = 139 (0x8b), region = 48 }
  0x84   : > { %v261_v28 = vshrl.u32 (!%p399_p0), %v260_v26, 7 }
  0x86   : > { %vm264_vm1 = vcmp.lt.s32.totalorder (!%p399_p0), %v261_v28, %v263_v27 }
  0x87   : > { %v262_v29 = vld [vmem:[%s811_s19] sm:$0xff] (!%p399_p0)  ;;  %v265_v30 = vsel (!%p399_p0), %vm264_vm1, %v247_v23, 0.0 }
  0x88   : > { %v266_v31 = vadd.f32 (!%p399_p0), %v265_v30, %v262_v29 }
  0x8a   : > { %267 = vst [vmem:[%s811_s19] sm:$0xff] %v266_v31 }
  0x8b PF: > { %s401_s21 = sshll.u32 %s614_s12, 7  ;;  %s282_s29 = sshll.u32 %s811_s19, 4  ;;  %s283_s29 = int_to_ptr.vmem [resolvable:$true] %s282_s29 }
  0x8c   : > { %s827_s28 = scalar_lea.hbm %s873_s2, %s401_s21  ;;  %s269_s25 = scalar_lea.sflag [#allocation4], %s797_s15 }
  0x8d   : > { %s536_s26 = scalar_lea.vmem %s283_s29, 128  ;;  %p886_p4 = scmp.ne.s32.totalorder %s878_s22, 0 }
  0x8e   : > { %p537_p7 = scmp.ne.s32.totalorder %s283_s29, %s536_s26  ;;  %s627_s3 = smov [#allocation7]  }
  0x8f   : > { %s540_s8 = sshll.u32 %s627_s3, 4  ;;  %s541_s8 = int_to_ptr.vmem [resolvable:$false] %s540_s8 }
  0x90   : > { %p538_p10 = pnand %p537_p7, %p886_p4  ;;  %s542_s18 = scalar_lea.vmem %s541_s8, 256 }
  0x91   : > { %p543_p1 = scmp.lt.s32.totalorder %s283_s29, %s541_s8  ;;  %p544_p2 = scmp.lt.s32.totalorder %s542_s18, %s536_s26 }
  0x92   : > { %p539_p12 = pneg %p538_p10 }
  0x93   : > { %p545_p9 = por %p544_p2, %p543_p1 }
  0x95   : > { %p546_p11 = pnand %p545_p9, %p539_p12 }
  0x97   : > { %549 = shalt.err (!%p546_p11)
}
  0x98   : > { %s550_s12 = scalar_lea.hbm %s827_s28, 128  ;;  %s554_s6 = scalar_lea.hbm %s873_s2, 256 }
  0x99   : > { %p551_p3 = scmp.ne.s32.totalorder %s827_s28, %s550_s12  ;;  %p555_p5 = scmp.lt.u32.totalorder %s827_s28, %s873_s2 }
  0x9a   : > { %p556_p8 = scmp.lt.u32.totalorder %s554_s6, %s550_s12  ;;  %p558_p7 = scmp.lt.u32.totalorder %s550_s12, %s827_s28 }
  0x9b   : > { %p552_p6 = pnand %p551_p3, %p886_p4 }
  0x9c   : > { %p557_p0 = por %p556_p8, %p555_p5 }
  0x9d   : > { %p553_p13 = pneg %p552_p6 }
  0x9e   : > { %p559_p10 = por %p558_p7, %p557_p0 }
  0xa0   : > { %p560_p12 = pnand %p559_p10, %p553_p13 }
  0xa2   : > { %563 = shalt.err (!%p560_p12)
}
  0xa3   : > { %408 = dma.vmem_to_hbm [thread:$0]  (%p886_p4), %s283_s29, 128, %s827_s28, %s269_s25  }
  0xa4 PF: > { %s294_s7 = sand.u32 1, %s602_s9   ;;  %p887_p1 = scmp.ne.s32.totalorder %s879_s24, 0 }
  0xa5   : > { %p888_p2 = scmp.ge.s32.totalorder %s622_s14, 2  ;;  %s295_s19 = scalar_lea.sflag [#allocation4], %s294_s7 }
  0xa7   : > { %p418_p9 = pnand %p888_p2, %p887_p1 }
  0xa9   : > { %597 = dma.done.wait (!%p418_p9), %s295_s19, 128  }
  0xaa   : > { %599 = vsyncadd (!%p418_p9), %s295_s19, 4294967168  ;;  %s21_s14 = sadd.s32 1, %s622_s14   ;;  %s889_s9 = smov %s606_s10 }
  0xab   : > { %p18_p11 = scmp.ge.s32.totalorder %s21_s14, 4   ;;  %s890_s10 = smov %s610_s11 }
  0xac   : > { %s891_s11 = smov %s699_s23  ;;  %s892_s12 = smov %s618_s13 }
  0xad   : > { %s893_s13 = smov %s895_s17  ;;  %20 = sbr.rel (!%p18_p11) target bundleno = 8 (0x8), region = 98 }
  0xb4   :  { %300 = vsyncpa [#allocation3], 1 }
  0xb5   :  { %302 = vsyncpa [#allocation3 + $0x1], 1 }
  0xb6   :  { %303 = vsyncpa [#allocation6], 1 }
  0xb7   :  { %305 = vsyncpa [#allocation6 + $0x1], 1 }
  0xb8   :  { %306 = vsyncpa [#allocation4], 1 }
  0xb9   :  { %308 = vsyncpa [#allocation4 + $0x1], 1 }

</bundles_post_ra>
